<compile_context>
chip_gen: v5e
topology: v5e:2x2
jax: 0.10.0
libtpu: 0.0.40
codegen_flags: <defaults>
</compile_context>

<pallas_src>
import jax
import jax.numpy as jnp
from jax import lax
from jax.experimental import pallas as pl
from jax.experimental.pallas import tpu as pltpu


def _stats_kernel(x_ref, sum_ref, sq_ref):
    # grid = (c, n, hw); c is 'parallel', (n, hw) are 'arbitrary' reduction axes.
    # x_ref   : (nt, ct, hwt)   activations (C on sublanes, HW on lanes)
    # sum_ref : (ct, 1)         per-channel running sum   (resident accumulator)
    # sq_ref  : (ct, 1)         per-channel running sumsq (resident accumulator)
    first = (pl.program_id(1) == 0) & (pl.program_id(2) == 0)

    @pl.when(first)
    def _():
        sum_ref[...] = jnp.zeros_like(sum_ref)
        sq_ref[...] = jnp.zeros_like(sq_ref)

    x = x_ref[...].astype(jnp.float32)          # widen once per (~2 MiB) tile
    xs = jnp.sum(x, axis=0)                     # (ct, hwt)  VPU adds over N tile
    xq = jnp.sum(x * x, axis=0)                 # (ct, hwt)
    sum_ref[...] += jnp.sum(xs, axis=1, keepdims=True)   # XLU lane reduce -> (ct, 1)
    sq_ref[...] += jnp.sum(xq, axis=1, keepdims=True)


def _apply_kernel(scale_ref, shift_ref, x_ref, o_ref):
    # grid = (n, c, hw), all 'parallel'.
    # scale_ref, shift_ref : (nt, ct, 1)  per-(sample, channel) affine, f32
    # x_ref, o_ref         : (nt, ct, hwt)
    x = x_ref[...].astype(jnp.float32)
    o_ref[...] = (x * scale_ref[...] + shift_ref[...]).astype(o_ref.dtype)


def _pick_tile(dim, align, cap):
    """Largest divisor of `dim` that is <= cap and, if possible, a multiple of `align`."""
    cap = max(1, min(cap, dim))
    if dim <= cap:
        return dim
    t = (cap // align) * align
    while t >= align:                    # prefer aligned divisors (lane/sublane friendly)
        if dim % t == 0:
            return t
        t -= align
    for t in range(cap, 0, -1):          # fallback: any divisor <= cap
        if dim % t == 0:
            return t
    return dim


def _tile_sizes(N, C, HW):
    """Budget-driven tiling: ~2 MiB f32 per block, HW (lanes) as large/contiguous
    as possible, C (sublanes) a multiple of 8 (or full), N as outer block dim."""
    block_elems = 512 * 1024                               # ~2 MiB of f32
    hwt = _pick_tile(HW, 128, block_elems // 8)            # leave room for ct >= 8
    ct = _pick_tile(C, 8, max(8, block_elems // hwt))
    nt = _pick_tile(N, 1, max(1, block_elems // (ct * hwt)))
    return nt, ct, hwt


def ccbn_forward(x, y, wg, bg, wb, bb, *, eps=1e-5):
    """x: (N, C, H, W) NCHW; y: (N, K). Linear weights wg/wb: (C, K); biases bg/bb: (C,)."""
    N, C, H, W = x.shape
    HW = H * W
    x3 = x.reshape(N, C, HW)                     # free view (contiguous), no transpose

    nt, ct, hwt = _tile_sizes(N, C, HW)
    gn, gc, gh = N // nt, C // ct, HW // hwt

    # ---- Pass 1: per-channel sum / sum-of-squares over (N, HW) --------------
    sums, sqs = pl.pallas_call(
        _stats_kernel,
        out_shape=(jax.ShapeDtypeStruct((C, 1), jnp.float32),
                   jax.ShapeDtypeStruct((C, 1), jnp.float32)),
        grid_spec=pltpu.PrefetchScalarGridSpec(
            num_scalar_prefetch=0,
            grid=(gc, gn, gh),
            in_specs=[
                pl.BlockSpec((nt, ct, hwt), lambda c, n, h: (n, c, h)),
            ],
            out_specs=(
                pl.BlockSpec((ct, 1), lambda c, n, h: (c, 0)),
                pl.BlockSpec((ct, 1), lambda c, n, h: (c, 0)),
            ),
        ),
        compiler_params=pltpu.CompilerParams(
            dimension_semantics=("parallel", "arbitrary", "arbitrary")),
    )(x3)

    # ---- Tiny XLA epilogue: stats + conditional gain/bias -> scale/shift ----
    count = jnp.float32(N * HW)
    mean = sums[:, 0] / count                                    # (C,)
    var = sqs[:, 0] / count - mean * mean                        # biased variance
    inv = lax.rsqrt(var + eps)                                   # (C,)

    yf = y.astype(jnp.float32)
    gain = 1.0 + yf @ wg.T.astype(jnp.float32) + bg.astype(jnp.float32)   # (N, C)
    bias = yf @ wb.T.astype(jnp.float32) + bb.astype(jnp.float32)         # (N, C)

    scale = gain * inv[None, :]                                  # (N, C)
    shift = bias - mean[None, :] * scale                         # (N, C)
    scale3 = scale.reshape(N, C, 1)
    shift3 = shift.reshape(N, C, 1)

    # ---- Pass 2: streaming apply  out = x * scale + shift -------------------
    out3 = pl.pallas_call(
        _apply_kernel,
        out_shape=jax.ShapeDtypeStruct((N, C, HW), x.dtype),
        grid_spec=pltpu.PrefetchScalarGridSpec(
            num_scalar_prefetch=0,
            grid=(gn, gc, gh),
            in_specs=[
                pl.BlockSpec((nt, ct, 1), lambda n, c, h: (n, c, 0)),     # scale
                pl.BlockSpec((nt, ct, 1), lambda n, c, h: (n, c, 0)),     # shift
                pl.BlockSpec((nt, ct, hwt), lambda n, c, h: (n, c, h)),   # x
            ],
            out_specs=pl.BlockSpec((nt, ct, hwt), lambda n, c, h: (n, c, h)),
        ),
        compiler_params=pltpu.CompilerParams(
            dimension_semantics=("parallel", "parallel", "parallel")),
    )(scale3, shift3, x3)

    return out3.reshape(N, C, H, W)


def ccbn_reference(x, y, wg, bg, wb, bb, *, eps=1e-5):
    """Pure-JAX reference mirroring the PyTorch forward (training mode, norm_style='bn')."""
    gain = (1.0 + y @ wg.T + bg)[:, :, None, None]
    bias = (y @ wb.T + bb)[:, :, None, None]
    xf = x.astype(jnp.float32)
    m = jnp.mean(xf, axis=(0, 2, 3), keepdims=True)
    var = jnp.mean(xf * xf, axis=(0, 2, 3), keepdims=True) - m * m
    out = (xf - m) * lax.rsqrt(var + eps)
    return out * gain + bias


def _run_case(key, N, C, H, W, K):
    k0, k1, k2, k3, k4, k5 = jax.random.split(key, 6)
    x = jax.random.normal(k0, (N, C, H, W), dtype=jnp.float32)
    y = jax.random.normal(k1, (N, K), dtype=jnp.float32)
    wg = jax.random.normal(k2, (C, K), dtype=jnp.float32) * 0.1   # gain.weight
    bg = jax.random.normal(k3, (C,), dtype=jnp.float32) * 0.1     # gain.bias
    wb = jax.random.normal(k4, (C, K), dtype=jnp.float32) * 0.1   # bias.weight
    bb = jax.random.normal(k5, (C,), dtype=jnp.float32) * 0.1     # bias.bias

    out = jax.block_until_ready(ccbn_forward(x, y, wg, bg, wb, bb))
    ref = ccbn_reference(x, y, wg, bg, wb, bb)
    assert out.shape == (N, C, H, W)
    assert jnp.allclose(out, ref, atol=1e-4, rtol=1e-4), "mismatch vs reference"


if __name__ == "__main__":
    # ccbn(output_size=C, input_size=K, which_linear=nn.Linear); x is NCHW, y is (N, K).
    key = jax.random.PRNGKey(0)
    k_a, k_b = jax.random.split(key)

    # Small shape implied by the module.
    _run_case(k_a, N=2, C=4, H=16, W=16, K=8)
    # Slightly larger shape that exercises the multi-block accumulation path in pass 1.
    _run_case(k_b, N=8, C=32, H=64, W=64, K=8)

    print("KERNEL_OK")
</pallas_src>

<mosaic_0001>
module attributes {stable_mosaic.version = 11 : i64} {
  func.func @_stats_kernel(%arg0: i32, %arg1: i32, %arg2: i32, %arg3: memref<2x4x256xf32, #tpu.memory_space<vmem>>, %arg4: memref<4x1xf32, #tpu.memory_space<vmem>>, %arg5: memref<4x1xf32, #tpu.memory_space<vmem>>) attributes {dimension_semantics = [#tpu.dimension_semantics<parallel>, #tpu.dimension_semantics<arbitrary>, #tpu.dimension_semantics<arbitrary>], iteration_bounds = array<i64: 1, 1, 1>, scalar_prefetch = 0 : i64, scratch_operands = 0 : i64, tpu.core_type = #tpu.core_type<tc>, window_params = [{transform_indices = @transform_0, window_bounds = array<i64: 2, 4, 256>}, {transform_indices = @transform_1, window_bounds = array<i64: 4, 1>}, {transform_indices = @transform_2, window_bounds = array<i64: 4, 1>}]} {
    %c0_i32 = arith.constant 0 : i32
    %0 = arith.cmpi eq, %arg1, %c0_i32 : i32
    %c0_i32_0 = arith.constant 0 : i32
    %1 = arith.cmpi eq, %arg2, %c0_i32_0 : i32
    %2 = arith.andi %0, %1 : i1
    %3 = arith.extui %2 : i1 to i32
    %c0_i32_1 = arith.constant 0 : i32
    %4 = arith.cmpi ne, %3, %c0_i32_1 : i32
    scf.if %4 {
      %cst_15 = arith.constant 0.000000e+00 : f32
      %19 = vector.broadcast %cst_15 : f32 to vector<4x1xf32>
      %c0_16 = arith.constant 0 : index
      %c0_17 = arith.constant 0 : index
      %20 = vector.load %arg4[%c0_16, %c0_17] : memref<4x1xf32, #tpu.memory_space<vmem>>, vector<4x1xf32>
      tpu.vector_store %arg4[%c0_16, %c0_17], %19 {strides = array<i32>} : memref<4x1xf32, #tpu.memory_space<vmem>>, vector<4x1xf32>,
      %cst_18 = arith.constant 0.000000e+00 : f32
      %21 = vector.broadcast %cst_18 : f32 to vector<4x1xf32>
      %c0_19 = arith.constant 0 : index
      %c0_20 = arith.constant 0 : index
      %22 = vector.load %arg5[%c0_19, %c0_20] : memref<4x1xf32, #tpu.memory_space<vmem>>, vector<4x1xf32>
      tpu.vector_store %arg5[%c0_19, %c0_20], %21 {strides = array<i32>} : memref<4x1xf32, #tpu.memory_space<vmem>>, vector<4x1xf32>,
    } else {
    }
    %c0 = arith.constant 0 : index
    %c0_2 = arith.constant 0 : index
    %c0_3 = arith.constant 0 : index
    %5 = vector.load %arg3[%c0, %c0_2, %c0_3] : memref<2x4x256xf32, #tpu.memory_space<vmem>>, vector<2x4x256xf32>
    %cst = arith.constant dense<0.000000e+00> : vector<4x256xf32>
    %6 = vector.multi_reduction <add>, %5, %cst [0] : vector<2x4x256xf32> to vector<4x256xf32>
    %7 = arith.mulf %5, %5 : vector<2x4x256xf32>
    %cst_4 = arith.constant dense<0.000000e+00> : vector<4x256xf32>
    %8 = vector.multi_reduction <add>, %7, %cst_4 [0] : vector<2x4x256xf32> to vector<4x256xf32>
    %c0_5 = arith.constant 0 : index
    %c0_6 = arith.constant 0 : index
    %9 = vector.load %arg4[%c0_5, %c0_6] : memref<4x1xf32, #tpu.memory_space<vmem>>, vector<4x1xf32>
    %cst_7 = arith.constant dense<0.000000e+00> : vector<4xf32>
    %10 = vector.multi_reduction <add>, %6, %cst_7 [1] : vector<4x256xf32> to vector<4xf32>
    %11 = vector.shape_cast %10 : vector<4xf32> to vector<4x1xf32>
    %12 = arith.addf %9, %11 : vector<4x1xf32>
    %c0_8 = arith.constant 0 : index
    %c0_9 = arith.constant 0 : index
    %13 = vector.load %arg4[%c0_8, %c0_9] : memref<4x1xf32, #tpu.memory_space<vmem>>, vector<4x1xf32>
    tpu.vector_store %arg4[%c0_8, %c0_9], %12 {strides = array<i32>} : memref<4x1xf32, #tpu.memory_space<vmem>>, vector<4x1xf32>,
    %c0_10 = arith.constant 0 : index
    %c0_11 = arith.constant 0 : index
    %14 = vector.load %arg5[%c0_10, %c0_11] : memref<4x1xf32, #tpu.memory_space<vmem>>, vector<4x1xf32>
    %cst_12 = arith.constant dense<0.000000e+00> : vector<4xf32>
    %15 = vector.multi_reduction <add>, %8, %cst_12 [1] : vector<4x256xf32> to vector<4xf32>
    %16 = vector.shape_cast %15 : vector<4xf32> to vector<4x1xf32>
    %17 = arith.addf %14, %16 : vector<4x1xf32>
    %c0_13 = arith.constant 0 : index
    %c0_14 = arith.constant 0 : index
    %18 = vector.load %arg5[%c0_13, %c0_14] : memref<4x1xf32, #tpu.memory_space<vmem>>, vector<4x1xf32>
    tpu.vector_store %arg5[%c0_13, %c0_14], %17 {strides = array<i32>} : memref<4x1xf32, #tpu.memory_space<vmem>>, vector<4x1xf32>,
    return
  }
  func.func @transform_0(%arg0: i32, %arg1: i32, %arg2: i32) -> (i32, i32, i32) {
    %c0_i32 = arith.constant 0 : i32
    return %arg1, %arg0, %arg2 : i32, i32, i32
  }
  func.func @transform_1(%arg0: i32, %arg1: i32, %arg2: i32) -> (i32, i32) {
    %c0_i32 = arith.constant 0 : i32
    %c0_i32_0 = arith.constant 0 : i32
    return %arg0, %c0_i32 : i32, i32
  }
  func.func @transform_2(%arg0: i32, %arg1: i32, %arg2: i32) -> (i32, i32) {
    %c0_i32 = arith.constant 0 : i32
    %c0_i32_0 = arith.constant 0 : i32
    return %arg0, %c0_i32 : i32, i32
  }
}

</mosaic_0001>

<bundles_post_ra>
// kernel: tpu_custom_call.1
= control target key start
LH: loop header
LB: loop body
LE: loop exit
PB: predicated region body
PF: predicated region fallthrough
CT: control target
= control target key end

     0   :  { %8 = vsyncpa [#allocation3], 0  ;;  %s134_s12 = smov [#allocation2]   ;;  %s135_s14 = smov 128   ;;  %s190_s0 = inlined_call_operand.hbm [shape: f32[2,4,256], index: 0, kind: input, shape index: {}]   ;;  %s191_s1 = inlined_call_operand.vmem [shape: f32[4,1], index: 1, kind: output, shape index: {0}]   ;;  %s192_s2 = inlined_call_operand.vmem [shape: f32[4,1], index: 2, kind: output, shape index: {1}]  }
   0x1   :  { %s13_s11 = sshll.u32 %s190_s0, 4  ;;  %s15_s13 = sshll.u32 %s134_s12, 4  ;;  %s14_s11 = int_to_ptr.hbm [resolvable:$true] %s13_s11  ;;  %s16_s13 = int_to_ptr.vmem [resolvable:$true] %s15_s13 }
   0x2   :  { %s136_s15 = smov 8  }
   0x3   :  { %21 = dma.hbm_to_vmem [thread:$0]  %s14_s11, 256, %s16_s13, [#allocation3], %s135_s14, %s135_s14, %s136_s15  }
   0x4   :  { %132 = dma.done.wait [#allocation3], 256  }
   0x5   :  { %133 = vsyncadd [#allocation3], 4294967040  ;;  %vm32_vm0 = vcmask 3072   ;;  %v137_v0 = vmov 0.0   ;;  %v35_v1 = vld [vmem:[#allocation2] sm:$0xff]  ;;  %v36_v2 = vld [vmem:[#allocation2 + $0x8] sm:$0xff] }
   0x6   :  { %33 = vst.msk [vmem:[%s191_s1] sm:$0xf] %vm32_vm0, %v137_v0  ;;  %v57_v3 = vmul.f32 %v35_v1, %v35_v1  ;;  %vm50_vm1 = vcmask 1043456   ;;  %v58_v4 = vmul.f32 %v36_v2, %v36_v2 }
   0x7   :  { %34 = vst.msk [vmem:[%s192_s2] sm:$0xf] %vm32_vm0, %v137_v0 }
   0x8   :  { %39 = vst [vmem:[#allocation1] ss:$2 sm:$0xff] %v35_v1 }
   0x9   :  { %43 = vst [vmem:[#allocation1 + $0x10] ss:$2 sm:$0xff] %v36_v2 }
   0xd   :  { %v78_v31 = vld [vmem:[%s191_s1] sm:$0xf] }
   0xe   :  { %v87_v34 = vld [vmem:[%s192_s2] sm:$0xf] }
   0xf   :  { %v40_v5 = vld.sshfl [vmem:[#allocation1] sm:$0xff pattern:$0x75316420]  ;;  %v41_v6 = vld.sshfl [vmem:[#allocation1 + $0x8] sm:$0xff pattern:$0x75316420] }
  0x10   :  { %v44_v7 = vld.sshfl [vmem:[#allocation1 + $0x10] sm:$0xff pattern:$0x75316420]  ;;  %v45_v8 = vld.sshfl [vmem:[#allocation1 + $0x18] sm:$0xff pattern:$0x75316420] }
  0x11   :  { %v51_v9 = vsel %vm50_vm1, %v40_v5, 0.0  ;;  %v52_v10 = vsel %vm50_vm1, %v44_v7, 0.0  ;;  %v54_v11 = vsel %vm50_vm1, %v41_v6, 0.0  ;;  %v55_v12 = vsel %vm50_vm1, %v45_v8, 0.0  ;;  %61 = vst [vmem:[#allocation1] ss:$2 sm:$0xff] %v57_v3 }
  0x12   :  { %v53_v13 = vadd.f32 %v52_v10, %v51_v9  ;;  %v56_v14 = vadd.f32 %v55_v12, %v54_v11  ;;  %65 = vst [vmem:[#allocation1 + $0x10] ss:$2 sm:$0xff] %v58_v4 }
  0x14   :  { %v79_v15 = vsel %vm50_vm1, %v53_v13, 0.0  ;;  %v80_v16 = vsel %vm50_vm1, %v56_v14, 0.0 }
  0x15   :  { %v81_v17 = vadd.f32 %v80_v16, %v79_v15 }
  0x17   :  { %82 = vadd.xlane.f32.xlu0 %v81_v17 }
  0x18   :  { %v62_v18 = vld.sshfl [vmem:[#allocation1] sm:$0xff pattern:$0x75316420]  ;;  %v63_v19 = vld.sshfl [vmem:[#allocation1 + $0x8] sm:$0xff pattern:$0x75316420] }
  0x19   :  { %v66_v20 = vld.sshfl [vmem:[#allocation1 + $0x10] sm:$0xff pattern:$0x75316420]  ;;  %v67_v21 = vld.sshfl [vmem:[#allocation1 + $0x18] sm:$0xff pattern:$0x75316420] }
  0x1a   :  { %v72_v22 = vsel %vm50_vm1, %v62_v18, 0.0  ;;  %v73_v23 = vsel %vm50_vm1, %v66_v20, 0.0  ;;  %v75_v24 = vsel %vm50_vm1, %v63_v19, 0.0  ;;  %v76_v25 = vsel %vm50_vm1, %v67_v21, 0.0 }
  0x1b   :  { %v74_v26 = vadd.f32 %v73_v23, %v72_v22  ;;  %v77_v27 = vadd.f32 %v76_v25, %v75_v24 }
  0x1d   :  { %v88_v28 = vsel %vm50_vm1, %v74_v26, 0.0  ;;  %v89_v29 = vsel %vm50_vm1, %v77_v27, 0.0 }
  0x1e   :  { %v90_v30 = vadd.f32 %v89_v29, %v88_v28 }
  0x20   :  { %91 = vadd.xlane.f32.xlu0 %v90_v30 }
  0x8a   :  { %v83_v32 = vpop.xlane.xlu0 %82 }
  0x8b   :  { %v84_v33 = vadd.f32 %v83_v32, %v78_v31 }
  0x8d   :  { %86 = vst.msk [vmem:[%s191_s1] sm:$0xf] %vm32_vm0, %v84_v33 }
  0x93   :  { %v92_v35 = vpop.xlane.xlu0 %91 }
  0x94   :  { %v93_v36 = vadd.f32 %v92_v35, %v87_v34 }
  0x96   :  { %94 = vst.msk [vmem:[%s192_s2] sm:$0xf] %vm32_vm0, %v93_v36 }
  0x97   :  { %103 = vsyncpa [#allocation3], 1 }

</bundles_post_ra>
